<compile_context>
chip_gen: v7x
topology: tpu7x:2x2x1
jax: 0.10.0
libtpu: 0.0.40
codegen_flags: <defaults>
</compile_context>

<pallas_src>
import math
import jax
import jax.numpy as jnp
from jax import lax
from jax.experimental import pallas as pl
from jax.experimental.pallas import tpu as pltpu

IN_FEATURES = 31
HIDDEN = 256
OUT_FEATURES = 5
OUT_PAD = 8          # logits padded 5 -> 8 on the sublane axis of the transposed output
LANE = 128
MAX_TM = 4096        # large tiles amortize the ~0.35us grid-step overhead


def _round_up(n, m):
    return ((n + m - 1) // m) * m


def _cdiv(a, b):
    return -(-a // b)


def mlp_kernel(x_ref, w1_ref, b1_ref, w2t_ref, b2t_ref, o_ref):
    # x arrives as raw f32 (tm, 31); cast to bf16 on the VPU (plenty of slot slack).
    x = x_ref[...].astype(jnp.bfloat16)
    # Linear(31->256): bf16 MXU with f32 accumulation; bias add + ReLU in f32.
    h = jnp.dot(x, w1_ref[...], preferred_element_type=jnp.float32) + b1_ref[...]
    h = jnp.maximum(h, 0.0).astype(jnp.bfloat16)                      # (tm, 256)
    # Second GEMM emitted directly in transposed (8, tm) form (A @ B^T, q@k^T-style):
    #   out_t[o, m] = sum_k w2t[o, k] * h[m, k]
    out_t = lax.dot_general(w2t_ref[...], h,
                            dimension_numbers=(((1,), (1,)), ((), ())),
                            preferred_element_type=jnp.float32)       # (8, tm)
    o_ref[...] = (out_t + b2t_ref[...]).astype(o_ref.dtype)


def prepare_params(w1, b1, w2, b2):
    """One-time weight prep (pad + bf16 cast), hoisted out of the per-call forward.

    w1: (31, 256), b1: (256,), w2: (256, 5), b2: (5,)  [x @ W + b layout]
    """
    w1_bf = w1.astype(jnp.bfloat16)                                    # (31, 256)
    b1_row = b1.reshape(1, HIDDEN).astype(jnp.float32)                 # (1, 256)
    w2t_bf = jnp.pad(w2.T.astype(jnp.bfloat16),
                     ((0, OUT_PAD - OUT_FEATURES), (0, 0)))            # (8, 256), zero rows
    b2_col = jnp.pad(b2.reshape(OUT_FEATURES, 1).astype(jnp.float32),
                     ((0, OUT_PAD - OUT_FEATURES), (0, 0)))            # (8, 1), zero pad
    return w1_bf, b1_row, w2t_bf, b2_col


def neural_network_forward(x, params):
    """x: (B, 31) f32 -> logits (B, 5) f32."""
    w1_bf, b1_row, w2t_bf, b2_col = params
    B = x.shape[0]

    # Tile rows: big (amortize grid-step overhead), 128-aligned when multi-tile
    # (lane-dense transposed output), capped at ~B/2 so v7x's 2 TCs both get work,
    # and never larger than round_up(B, 8) for tiny batches.
    tm = min(MAX_TM, _round_up(_cdiv(B, 2), LANE), _round_up(B, 8))
    n_tiles = _cdiv(B, tm)
    total_rows = n_tiles * tm

    flops = 2 * total_rows * (IN_FEATURES * HIDDEN + HIDDEN * OUT_PAD)
    bytes_accessed = (B * IN_FEATURES * 4 + w1_bf.size * 2 + w2t_bf.size * 2
                      + b1_row.size * 4 + b2_col.size * 4
                      + OUT_PAD * total_rows * 4)

    out_t = pl.pallas_call(
        mlp_kernel,
        out_shape=jax.ShapeDtypeStruct((OUT_PAD, total_rows), jnp.float32),
        grid=(n_tiles,),
        in_specs=[
            pl.BlockSpec((tm, IN_FEATURES), lambda i: (i, 0)),       # x: streamed f32
            pl.BlockSpec((IN_FEATURES, HIDDEN), lambda i: (0, 0)),   # w1: VMEM-resident
            pl.BlockSpec((1, HIDDEN), lambda i: (0, 0)),             # b1: VMEM-resident
            pl.BlockSpec((OUT_PAD, HIDDEN), lambda i: (0, 0)),       # w2^T: VMEM-resident
            pl.BlockSpec((OUT_PAD, 1), lambda i: (0, 0)),            # b2^T: VMEM-resident
        ],
        out_specs=pl.BlockSpec((OUT_PAD, tm), lambda i: (0, i)),     # transposed logits
        compiler_params=pltpu.CompilerParams(
            dimension_semantics=("parallel",),          # shard batch tiles across TCs
            vmem_limit_bytes=32 * 1024 * 1024),         # explicit (v5e default is 16 MiB)
        cost_estimate=pl.CostEstimate(
            flops=flops, transcendentals=0, bytes_accessed=bytes_accessed),
    )(x, w1_bf, b1_row, w2t_bf, b2_col)

    # Cheap: reads only 32 B/row of the transposed padded output.
    return out_t[:OUT_FEATURES, :B].T


def init_linear_params(key, fan_in, fan_out):
    # Deterministic init mimicking PyTorch nn.Linear default:
    # weight ~ U(-1/sqrt(fan_in), 1/sqrt(fan_in)), bias same bound.
    kw, kb = jax.random.split(key)
    bound = 1.0 / math.sqrt(fan_in)
    w = jax.random.uniform(kw, (fan_in, fan_out), jnp.float32, -bound, bound)
    b = jax.random.uniform(kb, (fan_out,), jnp.float32, -bound, bound)
    return w, b


if __name__ == "__main__":
    key = jax.random.PRNGKey(0)
    k_x, k_l1, k_l2 = jax.random.split(key, 3)

    B = 8
    x = jax.random.normal(k_x, (B, IN_FEATURES), jnp.float32)
    w1, b1 = init_linear_params(k_l1, IN_FEATURES, HIDDEN)
    w2, b2 = init_linear_params(k_l2, HIDDEN, OUT_FEATURES)

    params = prepare_params(w1, b1, w2, b2)          # one-time prep (not per forward)
    forward = jax.jit(neural_network_forward)

    logits = jax.block_until_ready(forward(x, params))
    assert logits.shape == (B, OUT_FEATURES)

    # Reference with identical bf16 casts (f32 accumulation) -> tight tolerance.
    xr = x.astype(jnp.bfloat16).astype(jnp.float32)
    w1r = w1.astype(jnp.bfloat16).astype(jnp.float32)
    w2r = w2.astype(jnp.bfloat16).astype(jnp.float32)
    h_ref = jnp.maximum(xr @ w1r + b1, 0.0)
    ref = h_ref.astype(jnp.bfloat16).astype(jnp.float32) @ w2r + b2
    assert jnp.allclose(logits, ref, atol=2e-3, rtol=2e-3), \
        float(jnp.max(jnp.abs(logits - ref)))

    # Loose sanity check vs the pure-f32 PyTorch-equivalent forward (bf16 rounding).
    ref_f32 = jnp.maximum(x @ w1 + b1, 0.0) @ w2 + b2
    assert jnp.allclose(logits, ref_f32, atol=5e-2, rtol=5e-2)

    print("KERNEL_OK")
</pallas_src>

<mosaic_0001>
module attributes {stable_mosaic.version = 11 : i64} {
  func.func @mlp_kernel(%arg0: i32, %arg1: memref<8x31xf32, #tpu.memory_space<vmem>>, %arg2: memref<31x256xbf16, #tpu.memory_space<vmem>>, %arg3: memref<1x256xf32, #tpu.memory_space<vmem>>, %arg4: memref<8x256xbf16, #tpu.memory_space<vmem>>, %arg5: memref<8x1xf32, #tpu.memory_space<vmem>>, %arg6: memref<8x8xf32, #tpu.memory_space<vmem>>) attributes {dimension_semantics = [#tpu.dimension_semantics<parallel>], iteration_bounds = array<i64: 1>, scalar_prefetch = 0 : i64, scratch_operands = 0 : i64, tpu.core_type = #tpu.core_type<tc>, window_params = [{transform_indices = @transform_0, window_bounds = array<i64: 8, 31>}, {pipeline_mode = #tpu.pipeline_mode<synchronous>, transform_indices = @transform_1, window_bounds = array<i64: 31, 256>}, {pipeline_mode = #tpu.pipeline_mode<synchronous>, transform_indices = @transform_2, window_bounds = array<i64: 1, 256>}, {pipeline_mode = #tpu.pipeline_mode<synchronous>, transform_indices = @transform_3, window_bounds = array<i64: 8, 256>}, {pipeline_mode = #tpu.pipeline_mode<synchronous>, transform_indices = @transform_4, window_bounds = array<i64: 8, 1>}, {transform_indices = @transform_5, window_bounds = array<i64: 8, 8>}]} {
    %c0 = arith.constant 0 : index
    %c0_0 = arith.constant 0 : index
    %0 = vector.load %arg1[%c0, %c0_0] : memref<8x31xf32, #tpu.memory_space<vmem>>, vector<8x31xf32>
    %1 = arith.truncf %0 : vector<8x31xf32> to vector<8x31xbf16>
    %c0_1 = arith.constant 0 : index
    %c0_2 = arith.constant 0 : index
    %2 = vector.load %arg2[%c0_1, %c0_2] : memref<31x256xbf16, #tpu.memory_space<vmem>>, vector<31x256xbf16>
    %cst = arith.constant dense<0.000000e+00> : vector<8x256xf32>
    %3 = tpu.matmul %1, %2, %cst {dimension_numbers = #tpu.dot_dimension_numbers<[1], [0], [0], [1], [0, 0, 1, 1], [], []>} : vector<8x31xbf16>, vector<31x256xbf16>, vector<8x256xf32> -> vector<8x256xf32>
    %c0_3 = arith.constant 0 : index
    %c0_4 = arith.constant 0 : index
    %4 = vector.load %arg3[%c0_3, %c0_4] : memref<1x256xf32, #tpu.memory_space<vmem>>, vector<1x256xf32>
    %5 = vector.broadcast %4 : vector<1x256xf32> to vector<8x256xf32>
    %6 = arith.addf %3, %5 : vector<8x256xf32>
    %cst_5 = arith.constant 0.000000e+00 : f32
    %7 = vector.broadcast %cst_5 : f32 to vector<8x256xf32>
    %8 = arith.maximumf %6, %7 : vector<8x256xf32>
    %9 = arith.truncf %8 : vector<8x256xf32> to vector<8x256xbf16>
    %c0_6 = arith.constant 0 : index
    %c0_7 = arith.constant 0 : index
    %10 = vector.load %arg4[%c0_6, %c0_7] : memref<8x256xbf16, #tpu.memory_space<vmem>>, vector<8x256xbf16>
    %cst_8 = arith.constant dense<0.000000e+00> : vector<8x8xf32>
    %11 = tpu.matmul %10, %9, %cst_8 {dimension_numbers = #tpu.dot_dimension_numbers<[1], [1], [0], [0], [0, 0, 1, 0], [], []>} : vector<8x256xbf16>, vector<8x256xbf16>, vector<8x8xf32> -> vector<8x8xf32>
    %c0_9 = arith.constant 0 : index
    %c0_10 = arith.constant 0 : index
    %12 = vector.load %arg5[%c0_9, %c0_10] : memref<8x1xf32, #tpu.memory_space<vmem>>, vector<8x1xf32>
    %13 = vector.broadcast %12 : vector<8x1xf32> to vector<8x8xf32>
    %14 = arith.addf %11, %13 : vector<8x8xf32>
    %c0_11 = arith.constant 0 : index
    %c0_12 = arith.constant 0 : index
    %15 = vector.load %arg6[%c0_11, %c0_12] : memref<8x8xf32, #tpu.memory_space<vmem>>, vector<8x8xf32>
    tpu.vector_store %arg6[%c0_11, %c0_12], %14 {strides = array<i32>} : memref<8x8xf32, #tpu.memory_space<vmem>>, vector<8x8xf32>,
    return
  }
  func.func @transform_0(%arg0: i32) -> (i32, i32) {
    %c0_i32 = arith.constant 0 : i32
    %c0_i32_0 = arith.constant 0 : i32
    return %arg0, %c0_i32 : i32, i32
  }
  func.func @transform_1(%arg0: i32) -> (i32, i32) {
    %c0_i32 = arith.constant 0 : i32
    %c0_i32_0 = arith.constant 0 : i32
    %c0_i32_1 = arith.constant 0 : i32
    return %c0_i32, %c0_i32_0 : i32, i32
  }
  func.func @transform_2(%arg0: i32) -> (i32, i32) {
    %c0_i32 = arith.constant 0 : i32
    %c0_i32_0 = arith.constant 0 : i32
    %c0_i32_1 = arith.constant 0 : i32
    return %c0_i32, %c0_i32_0 : i32, i32
  }
  func.func @transform_3(%arg0: i32) -> (i32, i32) {
    %c0_i32 = arith.constant 0 : i32
    %c0_i32_0 = arith.constant 0 : i32
    %c0_i32_1 = arith.constant 0 : i32
    return %c0_i32, %c0_i32_0 : i32, i32
  }
  func.func @transform_4(%arg0: i32) -> (i32, i32) {
    %c0_i32 = arith.constant 0 : i32
    %c0_i32_0 = arith.constant 0 : i32
    %c0_i32_1 = arith.constant 0 : i32
    return %c0_i32, %c0_i32_0 : i32, i32
  }
  func.func @transform_5(%arg0: i32) -> (i32, i32) {
    %c0_i32 = arith.constant 0 : i32
    %c0_i32_0 = arith.constant 0 : i32
    return %c0_i32, %arg0 : i32, i32
  }
}

</mosaic_0001>

<bundles_post_ra>
// kernel: neural_network_forward.1
= control target key start
LH: loop header
LB: loop body
LE: loop exit
PB: predicated region body
PF: predicated region fallthrough
CT: control target
= control target key end

     0   :  { %10 = vsyncpa [#allocation3], 0  ;;  %s346_s0 = inlined_call_operand.vmem [shape: f32[8,31], index: 0, kind: input, shape index: {}]   ;;  %s347_s1 = inlined_call_operand.hbm [shape: bf16[31,256], index: 1, kind: input, shape index: {}]   ;;  %s348_s2 = inlined_call_operand.hbm [shape: f32[1,256], index: 2, kind: input, shape index: {}]   ;;  %s349_s3 = inlined_call_operand.vmem [shape: bf16[8,256], index: 3, kind: input, shape index: {}]   ;;  %s350_s4 = inlined_call_operand.vmem [shape: f32[8,1], index: 4, kind: input, shape index: {}]   ;;  %s351_s5 = inlined_call_operand.vmem [shape: f32[8,8], index: 5, kind: output, shape index: {}]  }
   0x1   :  { %11 = vsyncpa [#allocation5], 0  ;;  %s274_s18 = smov [#allocation2]   ;;  %s226_s22 = scalar_lea.hbm %s347_s1, 512 }
   0x2   :  { %s19_s19 = sshll.u32 %s274_s18, 4  ;;  %p227_p0 = scmp.ne.s32.totalorder %s347_s1, %s226_s22  ;;  %s20_s19 = int_to_ptr.vmem [resolvable:$true] %s19_s19 }
   0x3   :  { %p230_p1 = scmp.lt.u32.totalorder %s226_s22, %s347_s1 }
   0x5   :  { %p232_p2 = pnand %p230_p1, %p227_p0 }
   0x7   :  { %235 = shalt.err (!%p232_p2)
}
   0x8   :  { %s236_s27 = scalar_lea.vmem %s20_s19, 512  ;;  %p241_p4 = scmp.lt.s32.totalorder %s20_s19, %s20_s19 }
   0x9   :  { %p237_p3 = scmp.ne.s32.totalorder %s20_s19, %s236_s27  ;;  %p242_p5 = scmp.lt.s32.totalorder %s236_s27, %s236_s27 }
   0xb   :  { %p243_p6 = por %p242_p5, %p241_p4 }
   0xd   :  { %p244_p7 = pnand %p243_p6, %p237_p3 }
   0xf   :  { %247 = shalt.err (!%p244_p7)
}
  0x10   :  { %s275_s28 = smov 128   ;;  %s276_s29 = smov 8  }
  0x11   :  { %25 = dma.hbm_to_vmem [thread:$0]  %s347_s1, 512, %s20_s19, [#allocation3], %s275_s28, %s275_s28, %s276_s29  }
  0x12   :  { %s277_s7 = smov [#allocation4]   ;;  %s248_s11 = scalar_lea.hbm %s348_s2, 32 }
  0x13   :  { %s32_s8 = sshll.u32 %s277_s7, 4  ;;  %p249_p8 = scmp.ne.s32.totalorder %s348_s2, %s248_s11  ;;  %s33_s8 = int_to_ptr.vmem [resolvable:$true] %s32_s8 }
  0x14   :  { %p252_p9 = scmp.lt.u32.totalorder %s248_s11, %s348_s2 }
  0x16   :  { %p254_p10 = pnand %p252_p9, %p249_p8 }
  0x18   :  { %257 = shalt.err (!%p254_p10)
}
  0x19   :  { %s258_s16 = scalar_lea.vmem %s33_s8, 32  ;;  %p263_p12 = scmp.lt.s32.totalorder %s33_s8, %s33_s8 }
  0x1a   :  { %p259_p11 = scmp.ne.s32.totalorder %s33_s8, %s258_s16  ;;  %p264_p13 = scmp.lt.s32.totalorder %s258_s16, %s258_s16 }
  0x1c   :  { %p265_p0 = por %p264_p13, %p263_p12 }
  0x1e   :  { %p266_p1 = pnand %p265_p0, %p259_p11 }
  0x20   :  { %269 = shalt.err (!%p266_p1)
}
  0x21   :  { %35 = dma.hbm_to_vmem [thread:$0]  %s348_s2, 32, %s33_s8, [#allocation5]  }
  0x22   :  { %270 = dma.done.wait [#allocation3], 512  }
  0x23   :  { %271 = vsyncadd [#allocation3], 4294966784 }
  0x24   :  { %272 = dma.done.wait [#allocation5], 32  }
  0x25   :  { %273 = vsyncadd [#allocation5], 4294967264  ;;  %v278_v0 = vmov 0   ;;  %vm87_vm0 = vcmask 1046528   ;;  %vm88_vm1 = vcmask 1047552   ;;  %v279_v1 = vmov 65535  }
  0x26   :  { %129 = vmatprep.mubr.bf16.mxu0 %v278_v0  ;;  %217 = vset.pattern.permute.xlu0 %v278_v0  ;;  %v89_v2 = vsel %vm87_vm0, 4294967295, %v279_v1  ;;  %v218_v3 = vld [vmem:[#allocation2 + $0x4] ss:$8 sps:$4 sm:$0xff]   ;;  %v220_v4 = vld [vmem:[#allocation2] ss:$8 sps:$4 sm:$0xff]   ;;  %vm83_vm2 = vcmask 252928   ;;  %v55_v15 = vlaneseq }
  0x27   :  { %v90_v5 = vsel %vm88_vm1, %v89_v2, 0  ;;  %97 = vmatprep.subr.bf16.mxu0 %v218_v3  ;;  %v221_v6 = vld [vmem:[#allocation2 + $0x14] ss:$8 sps:$4 sm:$0xff]   ;;  %v223_v7 = vld [vmem:[#allocation2 + $0x10] ss:$8 sps:$4 sm:$0xff]   ;;  %v47_v8 = vld [vmem:[%s346_s0] sm:$0xff] }
  0x28   :  { %98 = vmatpush1.bf16.msra.mxu0 %v220_v4  ;;  %v95_v9 = vand.u32 %v221_v6, %v90_v5  ;;  %v92_v10 = vand.u32 %v223_v7, %v90_v5  ;;  %v48_v11 = vpack.c.bf16 %v47_v8, %v47_v8  ;;  %v142_v12 = vld [vmem:[%s349_s3] sm:$0xff]  ;;  %v56_v16 = vshrl.u32 %v55_v15, 7 }
  0x29   :  { %v210_v13 = vcombine.high %v142_v12, %v142_v12  ;;  %v143_v14 = vld [vmem:[%s350_s4] sm:$0xff]  ;;  %v209_v32 = vcombine.low %v142_v12, %v142_v12  ;;  %vm196_vm3 = vcmask 64512  }
  0x2a   :  { %99 = vmatprep.subr.bf16.mxu0 %v95_v9  ;;  %146 = vperm.xlu0 %217, %v143_v14   ;;  %v57_v17 = vsub.s32 0, %v56_v16  ;;  %v53_v18 = vld [vmem:[#allocation4] sm:$0x3]  ;;  %v61_v19 = vsub.s32 1, %v56_v16 }
  0x2b   :  { %188 = vmatprep.mubr.bf16.mxu1 %v210_v13 }
  0x2c   :  { %100 = vmatpush1.bf16.msra.mxu0 %v92_v10  ;;  %v58_v20 = vrot.slane %v53_v18, %v57_v17  ;;  %v62_v21 = vrot.slane %v53_v18, %v61_v19 }
  0x2f   :  { %208 = vmatmul.mubr.msk.bf16.vlgmr.msra.gmra.mrb[0].mxu0 %vm83_vm2, %v48_v11 }
  0xa9   :  { %v147_v33 = vpop.permute.xlu0 %146 }
 0x102   :  { %v131_v22 = vpop.f32.mrb[0].mxu0 }
 0x103   :  { %v132_v23 = vadd.f32 %v131_v22, %v58_v20  ;;  %v133_v24 = vpop.f32.mrb[1].mxu0 }
 0x104   :  { %v134_v25 = vadd.f32 %v133_v24, %v62_v21  ;;  %v135_v26 = vpop.f32.mrb[2].mxu0 }
 0x105   :  { %v138_v27 = vmax.f32 %v132_v23, 0.0  ;;  %v136_v28 = vpop.f32.mrb[3].mxu0 }
 0x106   :  { %v139_v29 = vmax.f32 %v134_v25, 0.0 }
 0x107   :  { %v140_v31 = vpack.c.bf16 %v138_v27, %v138_v27 }
 0x108   :  { %v141_v30 = vpack.c.bf16 %v139_v29, %v139_v29 }
 0x10a   :  { %156 = vmatprep.subr.bf16.mxu1 %v141_v30 }
 0x10b   :  { %157 = vmatpush1.bf16.xpose.msra.mxu1 %v140_v31 }
 0x112   :  { %189 = vmatmul.mubr.bf16.vlgmr.msra.gmra.mrb[0].mxu1 %v209_v32 }
 0x1e5   :  { %v190_v34 = vpop.f32.mrb[0].mxu1 }
 0x1e6   :  { %v191_v35 = vadd.f32 %v190_v34, %v147_v33  ;;  %v192_v36 = vpop.f32.mrb[1].mxu1 }
 0x1e7   :  { %v193_v37 = vpop.f32.mrb[2].mxu1 }
 0x1e8   :  { %197 = vst.msk [vmem:[%s351_s5] sm:$0xff] %vm196_vm3, %v191_v35  ;;  %v194_v38 = vpop.f32.mrb[3].mxu1 }
 0x1e9   :  { %202 = vsyncpa [#allocation3], 1 }
 0x1ea   :  { %203 = vsyncpa [#allocation5], 1 }

</bundles_post_ra>
